<compile_context>
chip_gen: v5e
topology: v5e:2x2
jax: 0.10.0
libtpu: 0.0.40
codegen_flags: <defaults>
</compile_context>

<pallas_src>
import math

import jax
import jax.numpy as jnp
from jax.experimental import pallas as pl
from jax.experimental.pallas import tpu as pltpu

N_TRACK = 10
N_WAYPOINTS = 3
LAYER_DIMS = [64, 64]
DEFAULT_TILE_B = 512  # rows per grid step for large batches


def _round_up(x: int, m: int) -> int:
    return (x + m - 1) // m * m


def _mlp_kernel(l_ref, r_ref,
                w0l_ref, w0r_ref, b0_ref,
                w1_ref, b1_ref,
                w2_ref, b2_ref,
                w3_ref, b3_ref,
                out_ref):
    """One batch tile of the 4-layer MLP.

    Activations stream over the batch grid; weights/biases are VMEM-resident.
    Layer 0 uses split weights (left/right halves of W0) so there is no
    lane-axis concat inside the kernel.  Matmul operands use whatever dtype the
    wrapper shipped (bf16 by default); accumulate / bias / ReLU in f32.
    """
    # Layer 0: Linear(40 -> 64) as two matmuls + ReLU.
    h = (jnp.dot(l_ref[...], w0l_ref[...], preferred_element_type=jnp.float32)
         + jnp.dot(r_ref[...], w0r_ref[...], preferred_element_type=jnp.float32)
         + b0_ref[...])
    h = jnp.maximum(h, 0.0)

    # Layer 1: Linear(64 -> 64) + ReLU.
    h = jnp.dot(h.astype(w1_ref.dtype), w1_ref[...],
                preferred_element_type=jnp.float32) + b1_ref[...]
    h = jnp.maximum(h, 0.0)

    # Layer 2: Linear(64 -> 64) + ReLU.
    h = jnp.dot(h.astype(w2_ref.dtype), w2_ref[...],
                preferred_element_type=jnp.float32) + b2_ref[...]
    h = jnp.maximum(h, 0.0)

    # Layer 3: Linear(64 -> n_waypoints*2), no activation.
    out_ref[...] = (
        jnp.dot(h.astype(w3_ref.dtype), w3_ref[...],
                preferred_element_type=jnp.float32) + b3_ref[...]
    ).astype(out_ref.dtype)


def init_params(key, n_track=N_TRACK, n_waypoints=N_WAYPOINTS, layer_dims=LAYER_DIMS):
    """PyTorch-style (uniform +/- 1/sqrt(fan_in)) init.

    Weights are stored already transposed: (in_features, out_features).
    Biases are (1, out_features) so they stay 2-D inside the kernel.
    """
    dims = [n_track * 4, layer_dims[0]] + list(layer_dims) + [n_waypoints * 2]
    # dims = [40, 64, 64, 64, 6] -> 4 linear layers
    params = []
    for i in range(len(dims) - 1):
        fan_in, fan_out = dims[i], dims[i + 1]
        key, kw, kb = jax.random.split(key, 3)
        bound = 1.0 / math.sqrt(fan_in)
        w = jax.random.uniform(kw, (fan_in, fan_out), jnp.float32, -bound, bound)
        b = jax.random.uniform(kb, (1, fan_out), jnp.float32, -bound, bound)
        params.append((w, b))
    return params


def mlp_planner_forward(track_left, track_right, params,
                        n_track=N_TRACK, n_waypoints=N_WAYPOINTS,
                        tile_b=DEFAULT_TILE_B, use_bf16=True):
    """track_left/track_right: (b, n_track, 2) -> waypoints (b, n_waypoints, 2)."""
    b = track_left.shape[0]
    feat = n_track * 2
    out_dim = n_waypoints * 2
    compute_dtype = jnp.bfloat16 if use_bf16 else jnp.float32

    l_flat = track_left.reshape(b, feat).astype(compute_dtype)
    r_flat = track_right.reshape(b, feat).astype(compute_dtype)

    # Split W0 into left/right halves -> two MXU matmuls, no in-kernel concat.
    (w0, b0), (w1, b1), (w2, b2), (w3, b3) = params
    w0_l = w0[:feat].astype(compute_dtype)
    w0_r = w0[feat:].astype(compute_dtype)
    w1c, w2c, w3c = (w.astype(compute_dtype) for w in (w1, w2, w3))
    b0f, b1f, b2f, b3f = (x.astype(jnp.float32) for x in (b0, b1, b2, b3))
    weights = (w0_l, w0_r, b0f, w1c, b1f, w2c, b2f, w3c, b3f)

    # Batch tiling: one tile for small b (avoid per-step grid overhead),
    # otherwise stream tile_b-row tiles (BlockSpec double-buffers them).
    if b <= tile_b:
        tb = max(8, _round_up(b, 8))
    else:
        tb = tile_b
    b_pad = _round_up(b, tb)
    if b_pad != b:
        pad = ((0, b_pad - b), (0, 0))
        l_flat = jnp.pad(l_flat, pad)
        r_flat = jnp.pad(r_flat, pad)
    grid = (b_pad // tb,)

    def act_spec(width):
        return pl.BlockSpec((tb, width), lambda i: (i, 0))

    def resident_spec(arr):
        return pl.BlockSpec(arr.shape, lambda i: (0, 0))  # whole array, VMEM-resident

    # Advisory cost estimate for XLA scheduling around the custom call.
    itm = l_flat.dtype.itemsize
    flops = int(2 * b_pad * sum(w.shape[0] * w.shape[1] for w, _ in params))
    bytes_accessed = int(
        2 * b_pad * feat * itm                                      # activations in
        + b_pad * out_dim * 4                                       # output
        + sum(int(w.size) * itm for w in (w0_l, w0_r, w1c, w2c, w3c))
        + sum(int(x.size) * 4 for x in (b0f, b1f, b2f, b3f)))

    out = pl.pallas_call(
        _mlp_kernel,
        out_shape=jax.ShapeDtypeStruct((b_pad, out_dim), jnp.float32),
        grid=grid,
        in_specs=[act_spec(feat), act_spec(feat)] + [resident_spec(x) for x in weights],
        out_specs=act_spec(out_dim),
        compiler_params=pltpu.CompilerParams(
            dimension_semantics=("parallel",),     # shard batch tiles across TCs (v7x)
            vmem_limit_bytes=32 * 1024 * 1024),
        cost_estimate=pl.CostEstimate(
            flops=flops, transcendentals=0, bytes_accessed=bytes_accessed),
    )(l_flat, r_flat, *weights)

    return out[:b].reshape(b, n_waypoints, 2)


def _reference_forward(track_left, track_right, params,
                       n_track=N_TRACK, n_waypoints=N_WAYPOINTS,
                       compute_dtype=jnp.float32):
    """Pure-JAX reference with the same operand-dtype policy as the kernel."""
    b = track_left.shape[0]
    x = jnp.concatenate(
        [track_left.reshape(b, -1), track_right.reshape(b, -1)], axis=1
    ).astype(jnp.float32)
    for i, (w, bias) in enumerate(params):
        x = jnp.dot(x.astype(compute_dtype), w.astype(compute_dtype),
                    preferred_element_type=jnp.float32) + bias
        if i < len(params) - 1:
            x = jnp.maximum(x, 0.0)
    return x.reshape(b, n_waypoints, 2)


if __name__ == "__main__":
    key = jax.random.PRNGKey(0)
    k_params, k_left, k_right = jax.random.split(key, 3)

    params = init_params(k_params)

    # Small shapes consistent with the module: (b, n_track, 2).
    batch = 2
    track_left = jax.random.normal(k_left, (batch, N_TRACK, 2), jnp.float32)
    track_right = jax.random.normal(k_right, (batch, N_TRACK, 2), jnp.float32)

    out = mlp_planner_forward(track_left, track_right, params)
    out = jax.block_until_ready(out)
    assert out.shape == (batch, N_WAYPOINTS, 2), out.shape

    # Tight check vs a reference using the same bf16-operand / f32-accumulate policy.
    ref_bf16 = _reference_forward(track_left, track_right, params,
                                  compute_dtype=jnp.bfloat16)
    assert jnp.allclose(out, ref_bf16, atol=1e-3, rtol=1e-3), "mismatch vs bf16 reference"

    # Loose check vs the full-f32 reference (bf16 operand rounding only).
    ref_f32 = _reference_forward(track_left, track_right, params,
                                 compute_dtype=jnp.float32)
    assert jnp.allclose(out, ref_f32, atol=5e-2, rtol=5e-2), "mismatch vs f32 reference"

    # Exercise the multi-tile gridded path (padding + 3 grid steps) at small scale.
    k_l2, k_r2 = jax.random.split(jax.random.PRNGKey(1))
    batch2 = 37
    tl2 = jax.random.normal(k_l2, (batch2, N_TRACK, 2), jnp.float32)
    tr2 = jax.random.normal(k_r2, (batch2, N_TRACK, 2), jnp.float32)
    out2 = jax.block_until_ready(
        mlp_planner_forward(tl2, tr2, params, tile_b=16))
    ref2 = _reference_forward(tl2, tr2, params, compute_dtype=jnp.bfloat16)
    assert out2.shape == (batch2, N_WAYPOINTS, 2), out2.shape
    assert jnp.allclose(out2, ref2, atol=1e-3, rtol=1e-3), "mismatch on gridded path"

    print("KERNEL_OK")
</pallas_src>

<mosaic_0001>
module attributes {stable_mosaic.version = 11 : i64} {
  func.func @_mlp_kernel(%arg0: i32, %arg1: memref<8x20xbf16, #tpu.memory_space<vmem>>, %arg2: memref<8x20xbf16, #tpu.memory_space<vmem>>, %arg3: memref<20x64xbf16, #tpu.memory_space<vmem>>, %arg4: memref<20x64xbf16, #tpu.memory_space<vmem>>, %arg5: memref<1x64xf32, #tpu.memory_space<vmem>>, %arg6: memref<64x64xbf16, #tpu.memory_space<vmem>>, %arg7: memref<1x64xf32, #tpu.memory_space<vmem>>, %arg8: memref<64x64xbf16, #tpu.memory_space<vmem>>, %arg9: memref<1x64xf32, #tpu.memory_space<vmem>>, %arg10: memref<64x6xbf16, #tpu.memory_space<vmem>>, %arg11: memref<1x6xf32, #tpu.memory_space<vmem>>, %arg12: memref<8x6xf32, #tpu.memory_space<vmem>>) attributes {dimension_semantics = [#tpu.dimension_semantics<parallel>], iteration_bounds = array<i64: 1>, scalar_prefetch = 0 : i64, scratch_operands = 0 : i64, tpu.core_type = #tpu.core_type<tc>, window_params = [{transform_indices = @transform_0, window_bounds = array<i64: 8, 20>}, {transform_indices = @transform_1, window_bounds = array<i64: 8, 20>}, {pipeline_mode = #tpu.pipeline_mode<synchronous>, transform_indices = @transform_2, window_bounds = array<i64: 20, 64>}, {pipeline_mode = #tpu.pipeline_mode<synchronous>, transform_indices = @transform_3, window_bounds = array<i64: 20, 64>}, {pipeline_mode = #tpu.pipeline_mode<synchronous>, transform_indices = @transform_4, window_bounds = array<i64: 1, 64>}, {pipeline_mode = #tpu.pipeline_mode<synchronous>, transform_indices = @transform_5, window_bounds = array<i64: 64, 64>}, {pipeline_mode = #tpu.pipeline_mode<synchronous>, transform_indices = @transform_6, window_bounds = array<i64: 1, 64>}, {pipeline_mode = #tpu.pipeline_mode<synchronous>, transform_indices = @transform_7, window_bounds = array<i64: 64, 64>}, {pipeline_mode = #tpu.pipeline_mode<synchronous>, transform_indices = @transform_8, window_bounds = array<i64: 1, 64>}, {pipeline_mode = #tpu.pipeline_mode<synchronous>, transform_indices = @transform_9, window_bounds = array<i64: 64, 6>}, {pipeline_mode = #tpu.pipeline_mode<synchronous>, transform_indices = @transform_10, window_bounds = array<i64: 1, 6>}, {transform_indices = @transform_11, window_bounds = array<i64: 8, 6>}]} {
    %c0 = arith.constant 0 : index
    %c0_0 = arith.constant 0 : index
    %0 = vector.load %arg1[%c0, %c0_0] : memref<8x20xbf16, #tpu.memory_space<vmem>>, vector<8x20xbf16>
    %c0_1 = arith.constant 0 : index
    %c0_2 = arith.constant 0 : index
    %1 = vector.load %arg3[%c0_1, %c0_2] : memref<20x64xbf16, #tpu.memory_space<vmem>>, vector<20x64xbf16>
    %cst = arith.constant dense<0.000000e+00> : vector<8x64xf32>
    %2 = tpu.matmul %0, %1, %cst {dimension_numbers = #tpu.dot_dimension_numbers<[1], [0], [0], [1], [0, 0, 1, 1], [], []>} : vector<8x20xbf16>, vector<20x64xbf16>, vector<8x64xf32> -> vector<8x64xf32>
    %c0_3 = arith.constant 0 : index
    %c0_4 = arith.constant 0 : index
    %3 = vector.load %arg2[%c0_3, %c0_4] : memref<8x20xbf16, #tpu.memory_space<vmem>>, vector<8x20xbf16>
    %c0_5 = arith.constant 0 : index
    %c0_6 = arith.constant 0 : index
    %4 = vector.load %arg4[%c0_5, %c0_6] : memref<20x64xbf16, #tpu.memory_space<vmem>>, vector<20x64xbf16>
    %cst_7 = arith.constant dense<0.000000e+00> : vector<8x64xf32>
    %5 = tpu.matmul %3, %4, %cst_7 {dimension_numbers = #tpu.dot_dimension_numbers<[1], [0], [0], [1], [0, 0, 1, 1], [], []>} : vector<8x20xbf16>, vector<20x64xbf16>, vector<8x64xf32> -> vector<8x64xf32>
    %6 = arith.addf %2, %5 : vector<8x64xf32>
    %c0_8 = arith.constant 0 : index
    %c0_9 = arith.constant 0 : index
    %7 = vector.load %arg5[%c0_8, %c0_9] : memref<1x64xf32, #tpu.memory_space<vmem>>, vector<1x64xf32>
    %8 = vector.broadcast %7 : vector<1x64xf32> to vector<8x64xf32>
    %9 = arith.addf %6, %8 : vector<8x64xf32>
    %cst_10 = arith.constant 0.000000e+00 : f32
    %10 = vector.broadcast %cst_10 : f32 to vector<8x64xf32>
    %11 = arith.maximumf %9, %10 : vector<8x64xf32>
    %12 = arith.truncf %11 : vector<8x64xf32> to vector<8x64xbf16>
    %c0_11 = arith.constant 0 : index
    %c0_12 = arith.constant 0 : index
    %13 = vector.load %arg6[%c0_11, %c0_12] : memref<64x64xbf16, #tpu.memory_space<vmem>>, vector<64x64xbf16>
    %cst_13 = arith.constant dense<0.000000e+00> : vector<8x64xf32>
    %14 = tpu.matmul %12, %13, %cst_13 {dimension_numbers = #tpu.dot_dimension_numbers<[1], [0], [0], [1], [0, 0, 1, 1], [], []>} : vector<8x64xbf16>, vector<64x64xbf16>, vector<8x64xf32> -> vector<8x64xf32>
    %c0_14 = arith.constant 0 : index
    %c0_15 = arith.constant 0 : index
    %15 = vector.load %arg7[%c0_14, %c0_15] : memref<1x64xf32, #tpu.memory_space<vmem>>, vector<1x64xf32>
    %16 = vector.broadcast %15 : vector<1x64xf32> to vector<8x64xf32>
    %17 = arith.addf %14, %16 : vector<8x64xf32>
    %cst_16 = arith.constant 0.000000e+00 : f32
    %18 = vector.broadcast %cst_16 : f32 to vector<8x64xf32>
    %19 = arith.maximumf %17, %18 : vector<8x64xf32>
    %20 = arith.truncf %19 : vector<8x64xf32> to vector<8x64xbf16>
    %c0_17 = arith.constant 0 : index
    %c0_18 = arith.constant 0 : index
    %21 = vector.load %arg8[%c0_17, %c0_18] : memref<64x64xbf16, #tpu.memory_space<vmem>>, vector<64x64xbf16>
    %cst_19 = arith.constant dense<0.000000e+00> : vector<8x64xf32>
    %22 = tpu.matmul %20, %21, %cst_19 {dimension_numbers = #tpu.dot_dimension_numbers<[1], [0], [0], [1], [0, 0, 1, 1], [], []>} : vector<8x64xbf16>, vector<64x64xbf16>, vector<8x64xf32> -> vector<8x64xf32>
    %c0_20 = arith.constant 0 : index
    %c0_21 = arith.constant 0 : index
    %23 = vector.load %arg9[%c0_20, %c0_21] : memref<1x64xf32, #tpu.memory_space<vmem>>, vector<1x64xf32>
    %24 = vector.broadcast %23 : vector<1x64xf32> to vector<8x64xf32>
    %25 = arith.addf %22, %24 : vector<8x64xf32>
    %cst_22 = arith.constant 0.000000e+00 : f32
    %26 = vector.broadcast %cst_22 : f32 to vector<8x64xf32>
    %27 = arith.maximumf %25, %26 : vector<8x64xf32>
    %28 = arith.truncf %27 : vector<8x64xf32> to vector<8x64xbf16>
    %c0_23 = arith.constant 0 : index
    %c0_24 = arith.constant 0 : index
    %29 = vector.load %arg10[%c0_23, %c0_24] : memref<64x6xbf16, #tpu.memory_space<vmem>>, vector<64x6xbf16>
    %cst_25 = arith.constant dense<0.000000e+00> : vector<8x6xf32>
    %30 = tpu.matmul %28, %29, %cst_25 {dimension_numbers = #tpu.dot_dimension_numbers<[1], [0], [0], [1], [0, 0, 1, 1], [], []>} : vector<8x64xbf16>, vector<64x6xbf16>, vector<8x6xf32> -> vector<8x6xf32>
    %c0_26 = arith.constant 0 : index
    %c0_27 = arith.constant 0 : index
    %31 = vector.load %arg11[%c0_26, %c0_27] : memref<1x6xf32, #tpu.memory_space<vmem>>, vector<1x6xf32>
    %32 = vector.broadcast %31 : vector<1x6xf32> to vector<8x6xf32>
    %33 = arith.addf %30, %32 : vector<8x6xf32>
    %c0_28 = arith.constant 0 : index
    %c0_29 = arith.constant 0 : index
    %34 = vector.load %arg12[%c0_28, %c0_29] : memref<8x6xf32, #tpu.memory_space<vmem>>, vector<8x6xf32>
    tpu.vector_store %arg12[%c0_28, %c0_29], %33 {strides = array<i32>} : memref<8x6xf32, #tpu.memory_space<vmem>>, vector<8x6xf32>,
    return
  }
  func.func @transform_0(%arg0: i32) -> (i32, i32) {
    %c0_i32 = arith.constant 0 : i32
    %c0_i32_0 = arith.constant 0 : i32
    return %arg0, %c0_i32 : i32, i32
  }
  func.func @transform_1(%arg0: i32) -> (i32, i32) {
    %c0_i32 = arith.constant 0 : i32
    %c0_i32_0 = arith.constant 0 : i32
    return %arg0, %c0_i32 : i32, i32
  }
  func.func @transform_2(%arg0: i32) -> (i32, i32) {
    %c0_i32 = arith.constant 0 : i32
    %c0_i32_0 = arith.constant 0 : i32
    %c0_i32_1 = arith.constant 0 : i32
    return %c0_i32, %c0_i32_0 : i32, i32
  }
  func.func @transform_3(%arg0: i32) -> (i32, i32) {
    %c0_i32 = arith.constant 0 : i32
    %c0_i32_0 = arith.constant 0 : i32
    %c0_i32_1 = arith.constant 0 : i32
    return %c0_i32, %c0_i32_0 : i32, i32
  }
  func.func @transform_4(%arg0: i32) -> (i32, i32) {
    %c0_i32 = arith.constant 0 : i32
    %c0_i32_0 = arith.constant 0 : i32
    %c0_i32_1 = arith.constant 0 : i32
    return %c0_i32, %c0_i32_0 : i32, i32
  }
  func.func @transform_5(%arg0: i32) -> (i32, i32) {
    %c0_i32 = arith.constant 0 : i32
    %c0_i32_0 = arith.constant 0 : i32
    %c0_i32_1 = arith.constant 0 : i32
    return %c0_i32, %c0_i32_0 : i32, i32
  }
  func.func @transform_6(%arg0: i32) -> (i32, i32) {
    %c0_i32 = arith.constant 0 : i32
    %c0_i32_0 = arith.constant 0 : i32
    %c0_i32_1 = arith.constant 0 : i32
    return %c0_i32, %c0_i32_0 : i32, i32
  }
  func.func @transform_7(%arg0: i32) -> (i32, i32) {
    %c0_i32 = arith.constant 0 : i32
    %c0_i32_0 = arith.constant 0 : i32
    %c0_i32_1 = arith.constant 0 : i32
    return %c0_i32, %c0_i32_0 : i32, i32
  }
  func.func @transform_8(%arg0: i32) -> (i32, i32) {
    %c0_i32 = arith.constant 0 : i32
    %c0_i32_0 = arith.constant 0 : i32
    %c0_i32_1 = arith.constant 0 : i32
    return %c0_i32, %c0_i32_0 : i32, i32
  }
  func.func @transform_9(%arg0: i32) -> (i32, i32) {
    %c0_i32 = arith.constant 0 : i32
    %c0_i32_0 = arith.constant 0 : i32
    %c0_i32_1 = arith.constant 0 : i32
    return %c0_i32, %c0_i32_0 : i32, i32
  }
  func.func @transform_10(%arg0: i32) -> (i32, i32) {
    %c0_i32 = arith.constant 0 : i32
    %c0_i32_0 = arith.constant 0 : i32
    %c0_i32_1 = arith.constant 0 : i32
    return %c0_i32, %c0_i32_0 : i32, i32
  }
  func.func @transform_11(%arg0: i32) -> (i32, i32) {
    %c0_i32 = arith.constant 0 : i32
    %c0_i32_0 = arith.constant 0 : i32
    return %arg0, %c0_i32 : i32, i32
  }
}

</mosaic_0001>

<bundles_post_ra>
// kernel: tpu_custom_call.1
= control target key start
LH: loop header
LB: loop body
LE: loop exit
PB: predicated region body
PF: predicated region fallthrough
CT: control target
= control target key end

     0   :  { %16 = vsyncpa [#allocation3], 0  ;;  %s694_s0 = inlined_call_operand.vmem [shape: bf16[8,20], index: 0, kind: input, shape index: {}]   ;;  %s695_s1 = inlined_call_operand.hbm [shape: bf16[8,20], index: 1, kind: input, shape index: {}]   ;;  %s696_s2 = inlined_call_operand.hbm [shape: bf16[20,64], index: 2, kind: input, shape index: {}]   ;;  %s697_s3 = inlined_call_operand.hbm [shape: bf16[20,64], index: 3, kind: input, shape index: {}]   ;;  %s698_s4 = inlined_call_operand.vmem [shape: f32[1,64], index: 4, kind: input, shape index: {}]   ;;  %s699_s5 = inlined_call_operand.vmem [shape: bf16[64,64], index: 5, kind: input, shape index: {}]   ;;  %s700_s6 = inlined_call_operand.vmem [shape: f32[1,64], index: 6, kind: input, shape index: {}]   ;;  %s701_s7 = inlined_call_operand.hbm [shape: bf16[64,64], index: 7, kind: input, shape index: {}]   ;;  %s702_s8 = inlined_call_operand.vmem [shape: f32[1,64], index: 8, kind: input, shape index: {}]   ;;  %s703_s9 = inlined_call_operand.vmem [shape: bf16[64,6], index: 9, kind: input, shape index: {}]   ;;  %s704_s10 = inlined_call_operand.vmem [shape: f32[1,6], index: 10, kind: input, shape index: {}]   ;;  %s705_s11 = inlined_call_operand.hbm [shape: f32[8,6], index: 11, kind: output, shape index: {}]  }
   0x1   :  { %17 = vsyncpa [#allocation6], 0 }
   0x2   :  { %18 = vsyncpa [#allocation9], 0  ;;  %s37_s19 = sshll.u32 %s696_s2, 4  ;;  %s38_s19 = int_to_ptr.hbm [resolvable:$true] %s37_s19 }
   0x3   :  { %19 = vsyncpa [#allocation4], 0  ;;  %s570_s20 = smov [#allocation5]   ;;  %s27_s24 = sshll.u32 %s695_s1, 4  ;;  %s28_s24 = int_to_ptr.hbm [resolvable:$true] %s27_s24 }
   0x4   :  { %s39_s21 = sshll.u32 %s570_s20, 4  ;;  %s571_s25 = smov 64   ;;  %s40_s21 = int_to_ptr.vmem [resolvable:$true] %s39_s21 }
   0x5   :  { %s572_s26 = smov 4   ;;  %s573_s27 = smov [#allocation2]  }
   0x6   :  { %45 = dma.hbm_to_vmem [thread:$0]  %s38_s19, 192, %s40_s21, [#allocation6], %s571_s25, %s571_s25, %s572_s26  }
   0x7   :  { %s29_s28 = sshll.u32 %s573_s27, 4  ;;  %s50_s12 = sshll.u32 %s697_s3, 4  ;;  %s30_s28 = int_to_ptr.vmem [resolvable:$true] %s29_s28  ;;  %s51_s12 = int_to_ptr.hbm [resolvable:$true] %s50_s12 }
   0x8   :  { %32 = dma.hbm_to_vmem [thread:$0]  %s28_s24, 64, %s30_s28, [#allocation3]  }
   0x9   :  { %s69_s14 = sshll.u32 %s701_s7, 4  ;;  %s574_s15 = smov [#allocation7]   ;;  %s70_s14 = int_to_ptr.hbm [resolvable:$true] %s69_s14 }
   0xa   :  { %s52_s16 = sshll.u32 %s574_s15, 4  ;;  %s575_s1 = smov [#allocation8]   ;;  %s53_s16 = int_to_ptr.vmem [resolvable:$true] %s52_s16 }
   0xb   :  { %58 = dma.hbm_to_vmem [thread:$0]  %s51_s12, 192, %s53_s16, [#allocation6], %s571_s25, %s571_s25, %s572_s26  }
   0xc   :  { %s71_s17 = sshll.u32 %s575_s1, 4  ;;  %s72_s17 = int_to_ptr.vmem [resolvable:$true] %s71_s17 }
   0xd   :  { %77 = dma.hbm_to_vmem [thread:$0]  %s70_s14, 512, %s72_s17, [#allocation9], %s571_s25, %s571_s25, %s572_s26  }
   0xe   :  { %562 = dma.done.wait [#allocation3], 64  }
   0xf   :  { %563 = vsyncadd [#allocation3], 4294967232 }
  0x10   :  { %564 = dma.done.wait [#allocation6], 384  }
  0x11   :  { %565 = vsyncadd [#allocation6], 4294966912 }
  0x12   :  { %566 = dma.done.wait [#allocation9], 512  }
  0x13   :  { %567 = vsyncadd [#allocation9], 4294966784  ;;  %v108_v0 = vld [vmem:[#allocation7 + $0x8] sm:$0x3]  ;;  %v104_v1 = vld [vmem:[#allocation5 + $0x8] sm:$0x3] }
  0x14   :  { %v114_v2 = vunpack.c.l.b16 %v108_v0  ;;  %v144_v3 = vunpack.c.l.b16 %v104_v1  ;;  %vm122_vm0 = vcmask 1041408   ;;  %v422_v4 = vld [vmem:[%s699_s5 + $0x18] sm:$0xff]  ;;  %v421_v7 = vld [vmem:[%s699_s5 + $0x10] sm:$0xff]  ;;  %v417_v11 = vld [vmem:[#allocation5] sm:$0xff]  ;;  %vm118_vm1 = vcmask 162816   ;;  %s576_s17 = smov [#allocation10]  }
  0x15   :  { %218 = vmatpush.bf16.msra.mxu2 %v422_v4  ;;  %v418_v10 = vld [vmem:[#allocation7] sm:$0xff]  ;;  %v105_v12 = vld [vmem:[#allocation2] sm:$0xf]  ;;  %v420_v14 = vld [vmem:[%s699_s5 + $0x8] sm:$0xff]  ;;  %vm210_vm2 = vcmask 523264   ;;  %s342_s3 = sshll.u32 %s576_s17, 4  ;;  %s343_s3 = int_to_ptr.vmem [resolvable:$true] %s342_s3 }
  0x16   :  { %v116_v5 = vpack.c.b16 %v114_v2, %v114_v2  ;;  %v146_v6 = vpack.c.b16 %v144_v3, %v144_v3  ;;  %v101_v13 = vld [vmem:[%s694_s0] sm:$0xf]  ;;  %v426_v16 = vld [vmem:[#allocation8 + $0x18] sm:$0xff]  ;;  %v425_v17 = vld [vmem:[#allocation8 + $0x10] sm:$0xff]  ;;  %s344_s18 = sshll.u32 %s705_s11, 4  ;;  %vm335_vm3 = vcmask 48128   ;;  %s345_s18 = int_to_ptr.hbm [resolvable:$true] %s344_s18 }
  0x17   :  { %v419_v15 = vld [vmem:[%s699_s5] sm:$0xff]  ;;  %272 = vmatpush.bf16.msra.mxu3 %v426_v16  ;;  %v430_v29 = vld [vmem:[%s703_s9 + $0x18] sm:$0xff]  ;;  %v429_v30 = vld [vmem:[%s703_s9 + $0x10] sm:$0xff] }
  0x18   :  { %v124_v8 = vsel %vm122_vm0, %v116_v5, 0  ;;  %v152_v9 = vsel %vm122_vm0, %v146_v6, 0  ;;  %v438_v18 = vld [vmem:[%s698_s4] ss:$0 sm:$0xff]  ;;  %v424_v27 = vld [vmem:[#allocation8 + $0x8] sm:$0xff] }
  0x19   :  { %132 = vmatpush.bf16.msra.mxu0 %v124_v8  ;;  %160 = vmatpush.bf16.msra.mxu1 %v152_v9  ;;  %v423_v28 = vld [vmem:[#allocation8] sm:$0xff]  ;;  %v428_v31 = vld [vmem:[%s703_s9 + $0x8] sm:$0xff] }
  0x1a   :  { %219 = vmatpush.bf16.msra.mxu2 %v421_v7  ;;  %v439_v32 = vld [vmem:[%s700_s6] ss:$0 sm:$0xff] }
  0x1b   :  { %273 = vmatpush.bf16.msra.mxu3 %v425_v17  ;;  %v427_v38 = vld [vmem:[%s703_s9] sm:$0xff] }
  0x1c   :  { %v440_v39 = vld [vmem:[%s702_s8] ss:$0 sm:$0xff] }
  0x1d   :  { %133 = vmatpush.bf16.msra.mxu0 %v418_v10  ;;  %161 = vmatpush.bf16.msra.mxu1 %v417_v11  ;;  %v441_v45 = vld [vmem:[%s704_s10] ss:$0 sm:$0xff] }
  0x1e   :  { %220 = vmatpush.bf16.msra.mxu2 %v420_v14 }
  0x1f   :  { %274 = vmatpush.bf16.msra.mxu3 %v424_v27 }
  0x20   :  { %360 = vmatmul.msk.bf16.vlgmr.msra.gmra.mxu0 %vm118_vm1, %v105_v12  ;;  %365 = vmatmul.msk.bf16.vlgmr.msra.gmra.mxu1 %vm118_vm1, %v101_v13 }
  0x21   :  { %326 = vmatpush.bf16.msrb.mxu0 %v430_v29 }
  0x22   :  { %221 = vmatpush.bf16.msra.mxu2 %v419_v15 }
  0x23   :  { %275 = vmatpush.bf16.msra.mxu3 %v423_v28 }
  0x25   :  { %327 = vmatpush.bf16.msrb.mxu0 %v429_v30 }
  0x29   :  { %328 = vmatpush.bf16.msrb.mxu0 %v428_v31 }
  0x2d   :  { %329 = vmatpush.bf16.msrb.mxu0 %v427_v38 }
  0x9d   :  { %v135_v19 = vpop.f32.mrf.mxu0  ;;  %v163_v20 = vpop.f32.mrf.mxu1 }
  0x9e   :  { %v164_v21 = vadd.f32 %v163_v20, %v135_v19 }
  0xa0   :  { %v171_v22 = vadd.f32 %v438_v18, %v164_v21 }
  0xa2   :  { %v172_v23 = vmax.f32 %v171_v22, 0.0 }
  0xa4   :  { %v173_v24 = vpack.c.bf16 %v172_v23, %v172_v23 }
  0xa5   :  { %v137_v25 = vpop.f32.mrf.mxu0  ;;  %v165_v26 = vpop.f32.mrf.mxu1 }
  0xa6   :  { %382 = vmatmul.msk.bf16.vlgmr.msra.gmra.mxu2 %vm210_vm2, %v173_v24 }
 0x129   :  { %v223_v33 = vpop.f32.mrf.mxu2 }
 0x12a   :  { %v224_v34 = vadd.f32 %v439_v32, %v223_v33 }
 0x12c   :  { %v227_v35 = vmax.f32 %v224_v34, 0.0 }
 0x12e   :  { %v228_v36 = vpack.c.bf16 %v227_v35, %v227_v35 }
 0x130   :  { %399 = vmatmul.msk.bf16.vlgmr.msra.gmra.mxu3 %vm210_vm2, %v228_v36 }
 0x131   :  { %v225_v37 = vpop.f32.mrf.mxu2 }
 0x1b3   :  { %v277_v40 = vpop.f32.mrf.mxu3 }
 0x1b4   :  { %v278_v41 = vadd.f32 %v440_v39, %v277_v40 }
 0x1b6   :  { %v281_v42 = vmax.f32 %v278_v41, 0.0 }
 0x1b8   :  { %v282_v43 = vpack.c.bf16 %v281_v42, %v281_v42 }
 0x1ba   :  { %416 = vmatmul.msk.bf16.vlgmr.msrb.gmra.mxu0 %vm210_vm2, %v282_v43 }
 0x1bb   :  { %v279_v44 = vpop.f32.mrf.mxu3 }
 0x237   :  { %v331_v46 = vpop.f32.mrf.mxu0 }
 0x238   :  { %v332_v47 = vadd.f32 %v441_v45, %v331_v46 }
 0x23a   :  { %336 = vst.msk [vmem:[#allocation10] sm:$0xff] %vm335_vm3, %v332_v47 }
 0x23b   :  { %347 = dma.vmem_to_hbm [thread:$0]  %s343_s3, 128, %s345_s18, [#allocation4]  }
 0x23f   :  { %v333_v48 = vpop.f32.mrf.mxu0 }
 0x240   :  { %568 = dma.done.wait [#allocation4], 128  }
 0x241   :  { %569 = vsyncadd [#allocation4], 4294967168 }
 0x242   :  { %352 = vsyncpa [#allocation3], 1 }
 0x243   :  { %353 = vsyncpa [#allocation6], 1 }
 0x244   :  { %354 = vsyncpa [#allocation9], 1 }
 0x245   :  { %355 = vsyncpa [#allocation4], 1 }

</bundles_post_ra>
